<compile_context>
chip_gen: v5e
topology: v5e:2x2
jax: 0.10.0
libtpu: 0.0.40
codegen_flags: <defaults>
</compile_context>

<pallas_src>
import functools

import jax
import jax.numpy as jnp
from jax.experimental import pallas as pl
from jax.experimental.pallas import tpu as pltpu


_LANES = 128      # vreg lane width; keep the last dim lane-dense.
_ROW_ALIGN = 32   # multiple of 32 rows keeps f32/bf16/int8 sublane packing legal.


def _normalization_kernel(x_ref, o_ref, *, mean, inv_std):
    # x_ref: (block_rows, 128) tile in VMEM; o_ref: same shape, float32.
    # Cast is fused into the elementwise compute (no materialized f32 copy).
    x = x_ref[...].astype(jnp.float32)
    o_ref[...] = (x - mean) * inv_std


def _round_up(n, m):
    return ((n + m - 1) // m) * m


def _vmem_budget_bytes():
    # Target total footprint of the double-buffered in+out blocks.
    # v5e: default scoped VMEM is 16 MiB -> keep buffers at ~8 MiB.
    # v6e / v7x: default scoped VMEM is 32 MiB -> ~16 MiB of buffers.
    try:
        kind = jax.devices()[0].device_kind.lower()
    except Exception:
        kind = ""
    if "v5 lite" in kind or "v5e" in kind or "v5litepod" in kind:
        return 8 * 1024 * 1024
    return 16 * 1024 * 1024


def _pick_block_rows(rows, in_itemsize):
    out_itemsize = 4  # float32 output
    bytes_per_row = _LANES * (in_itemsize + out_itemsize)
    # Pallas double-buffers each operand: total ~= 2 * (in_block + out_block).
    max_rows = _vmem_budget_bytes() // (2 * bytes_per_row)
    max_rows = max(_ROW_ALIGN, (max_rows // _ROW_ALIGN) * _ROW_ALIGN)
    if rows < 512:
        # Small tensor: single full-extent block (always a legal block shape).
        return rows
    if rows <= max_rows:
        # Split into >=2 grid steps so v7x's 2 TensorCores both get work.
        return min(_round_up(pl.cdiv(rows, 2), _ROW_ALIGN), max_rows)
    return max_rows


def normalization(x, mean=127.5, std=127.5):
    """Pallas implementation of Normalization.forward: (x.float() - mean) / std."""
    orig_shape = x.shape
    total = x.size
    flat = x.reshape(-1)

    # Lane-dense layout: pad only the <=127-element tail (no-op when total is a
    # multiple of 128, which covers common image shapes).
    padded_total = _round_up(max(total, _LANES), _LANES)
    if padded_total != total:
        flat = jnp.pad(flat, (0, padded_total - total))
    rows = padded_total // _LANES
    x2d = flat.reshape(rows, _LANES)

    block_rows = _pick_block_rows(rows, x2d.dtype.itemsize)
    grid = (pl.cdiv(rows, block_rows),)  # partial last block: masked writes (elementwise-safe)

    kernel = functools.partial(
        _normalization_kernel, mean=float(mean), inv_std=1.0 / float(std))

    out2d = pl.pallas_call(
        kernel,
        out_shape=jax.ShapeDtypeStruct((rows, _LANES), jnp.float32),
        grid=grid,
        in_specs=[pl.BlockSpec((block_rows, _LANES), lambda i: (i, 0))],
        out_specs=pl.BlockSpec((block_rows, _LANES), lambda i: (i, 0)),
        compiler_params=pltpu.CompilerParams(
            dimension_semantics=("parallel",)),  # shards across v7x's 2 TCs
    )(x2d)

    out = out2d.reshape(-1)
    if padded_total != total:
        out = out[:total]
    return out.reshape(orig_shape)


if __name__ == "__main__":
    key = jax.random.PRNGKey(0)
    # Image-like data in [0, 255], NCHW, small shape.
    x = jax.random.uniform(key, (2, 4, 16, 16), dtype=jnp.float32) * 255.0

    y = jax.block_until_ready(normalization(x, mean=127.5, std=127.5))
    ref = (x.astype(jnp.float32) - 127.5) / 127.5
    assert y.shape == x.shape and y.dtype == jnp.float32
    assert jnp.allclose(y, ref, atol=1e-6)

    # Non-float input exercises the module's "cast to float" path.
    xb = x.astype(jnp.bfloat16)
    yb = jax.block_until_ready(normalization(xb))
    refb = (xb.astype(jnp.float32) - 127.5) / 127.5
    assert yb.dtype == jnp.float32
    assert jnp.allclose(yb, refb, atol=1e-6)

    # Size not divisible by 128 exercises the tail-pad / tail-slice path.
    xo = jax.random.uniform(jax.random.PRNGKey(1), (3, 5, 7), dtype=jnp.float32) * 255.0
    yo = jax.block_until_ready(normalization(xo))
    refo = (xo - 127.5) / 127.5
    assert yo.shape == xo.shape and yo.dtype == jnp.float32
    assert jnp.allclose(yo, refo, atol=1e-6)

    print("KERNEL_OK")
</pallas_src>

<mosaic_0001>
module attributes {stable_mosaic.version = 11 : i64} {
  func.func @_normalization_kernel(%arg0: i32, %arg1: memref<16x128xf32, #tpu.memory_space<vmem>>, %arg2: memref<16x128xf32, #tpu.memory_space<vmem>>) attributes {dimension_semantics = [#tpu.dimension_semantics<parallel>], iteration_bounds = array<i64: 1>, scalar_prefetch = 0 : i64, scratch_operands = 0 : i64, tpu.core_type = #tpu.core_type<tc>, window_params = [{transform_indices = @transform_0, window_bounds = array<i64: 16, 128>}, {transform_indices = @transform_1, window_bounds = array<i64: 16, 128>}]} {
    %c0 = arith.constant 0 : index
    %c0_0 = arith.constant 0 : index
    %0 = vector.load %arg1[%c0, %c0_0] : memref<16x128xf32, #tpu.memory_space<vmem>>, vector<16x128xf32>
    %cst = arith.constant 1.275000e+02 : f32
    %1 = vector.broadcast %cst : f32 to vector<16x128xf32>
    %2 = arith.subf %0, %1 : vector<16x128xf32>
    %cst_1 = arith.constant 0.00784313772 : f32
    %3 = vector.broadcast %cst_1 : f32 to vector<16x128xf32>
    %4 = arith.mulf %2, %3 : vector<16x128xf32>
    %c0_2 = arith.constant 0 : index
    %c0_3 = arith.constant 0 : index
    %5 = vector.load %arg2[%c0_2, %c0_3] : memref<16x128xf32, #tpu.memory_space<vmem>>, vector<16x128xf32>
    tpu.vector_store %arg2[%c0_2, %c0_3], %4 {strides = array<i32>} : memref<16x128xf32, #tpu.memory_space<vmem>>, vector<16x128xf32>,
    return
  }
  func.func @transform_0(%arg0: i32) -> (i32, i32) {
    %c0_i32 = arith.constant 0 : i32
    %c0_i32_0 = arith.constant 0 : i32
    return %arg0, %c0_i32 : i32, i32
  }
  func.func @transform_1(%arg0: i32) -> (i32, i32) {
    %c0_i32 = arith.constant 0 : i32
    %c0_i32_0 = arith.constant 0 : i32
    return %arg0, %c0_i32 : i32, i32
  }
}

</mosaic_0001>

<bundles_post_ra>
// kernel: tpu_custom_call.1
= control target key start
LH: loop header
LB: loop body
LE: loop exit
PB: predicated region body
PF: predicated region fallthrough
CT: control target
= control target key end

     0   :  { %6 = vsyncpa [#allocation3], 0  ;;  %s130_s0 = inlined_call_operand.hbm [shape: f32[16,128], index: 0, kind: input, shape index: {}]   ;;  %s131_s1 = inlined_call_operand.hbm [shape: f32[16,128], index: 1, kind: output, shape index: {}]  }
   0x1   :  { %7 = vsyncpa [#allocation4], 0  ;;  %s12_s8 = sshll.u32 %s130_s0, 4  ;;  %s110_s9 = smov [#allocation2]   ;;  %s13_s8 = int_to_ptr.hbm [resolvable:$true] %s12_s8 }
   0x2   :  { %s14_s10 = sshll.u32 %s110_s9, 4  ;;  %s111_s11 = smov 128   ;;  %s15_s10 = int_to_ptr.vmem [resolvable:$true] %s14_s10 }
   0x3   :  { %s112_s12 = smov 8  }
   0x4   :  { %20 = dma.hbm_to_vmem [thread:$0]  %s13_s8, 256, %s15_s10, [#allocation3], %s111_s11, %s111_s11, %s112_s12  }
   0x5   :  { %106 = dma.done.wait [#allocation3], 256  }
   0x6   :  { %107 = vsyncadd [#allocation3], 4294967040  ;;  %v25_v0 = vld [vmem:[#allocation2] sm:$0xff]  ;;  %v26_v1 = vld [vmem:[#allocation2 + $0x8] sm:$0xff]  ;;  %s113_s13 = smov [#allocation5]   ;;  %s39_s17 = sshll.u32 %s131_s1, 4  ;;  %s40_s17 = int_to_ptr.hbm [resolvable:$true] %s39_s17 }
   0x7   :  { %v52_v2 = vadd.f32 -127.5, %v25_v0  ;;  %v53_v3 = vadd.f32 -127.5, %v26_v1  ;;  %s37_s14 = sshll.u32 %s113_s13, 4  ;;  %s38_s14 = int_to_ptr.vmem [resolvable:$true] %s37_s14 }
   0x9   :  { %v29_v4 = vmul.f32 0.007843138, %v52_v2  ;;  %v30_v5 = vmul.f32 0.007843138, %v53_v3 }
   0xb   :  { %31 = vst [vmem:[#allocation5] sm:$0xff] %v29_v4 }
   0xc   :  { %32 = vst [vmem:[#allocation5 + $0x8] sm:$0xff] %v30_v5 }
   0xd   :  { %45 = dma.vmem_to_hbm [thread:$0]  %s38_s14, 256, %s40_s17, [#allocation4], %s111_s11, %s111_s11, %s112_s12  }
   0xe   :  { %108 = dma.done.wait [#allocation4], 256  }
   0xf   :  { %109 = vsyncadd [#allocation4], 4294967040 }
  0x10   :  { %50 = vsyncpa [#allocation3], 1 }
  0x11   :  { %51 = vsyncpa [#allocation4], 1 }

</bundles_post_ra>
